<compile_context>
chip_gen: v7x
topology: tpu7x:2x2x1
jax: 0.10.0
libtpu: 0.0.40
codegen_flags: <defaults>
</compile_context>

<pallas_src>
import functools

import jax
import jax.numpy as jnp
from jax.experimental import pallas as pl
from jax.experimental.pallas import tpu as pltpu


def _round_up(a: int, b: int) -> int:
    return ((a + b - 1) // b) * b


def pack_router_weight(expert_embedding, *, mxu_bf16=True):
    """One-time expansion of the (head_dim, num_experts) router weight.

    Returns (w_packed, pack): w_packed is the block-diagonal
    (pack*head_dim, round_up(pack*num_experts, 128)) matrix consumed by the
    lane-dense kernel.  Call this once at parameter-init time and pass the
    result to mh_router_pallas (avoids re-expanding every forward call).
    """
    k, n = expert_embedding.shape
    pack = 128 // k if (k < 128 and 128 % k == 0) else 1
    w = expert_embedding
    if pack > 1:
        eye = jnp.eye(pack, dtype=w.dtype)
        # bd[p*k + a, q*n + b] = eye[p, q] * w[a, b]  (pack diagonal copies of w)
        w = jnp.einsum("pq,ab->paqb", eye, w).reshape(pack * k, pack * n)
    # Pad N (weight-only, tiny & one-time) so output stores are always lane-dense;
    # this also hardens the pack==1 fallback for head_dims that don't divide 128.
    n_packed = w.shape[1]
    n_lanes = _round_up(n_packed, 128)
    if n_lanes != n_packed:
        w = jnp.pad(w, ((0, 0), (0, n_lanes - n_packed)))
    if mxu_bf16:
        w = w.astype(jnp.bfloat16)
    return w, pack


def _mh_router_kernel(x_ref, w_ref, o_ref, *, mxu_bf16):
    x = x_ref[...]
    w = w_ref[...]
    if mxu_bf16:
        # Cast MXU operands in-kernel (lands in VPU slack); HBM I/O stays in the
        # input dtype and accumulation stays f32 via preferred_element_type.
        x = x.astype(jnp.bfloat16)
        w = w.astype(jnp.bfloat16)
    o_ref[...] = jnp.dot(x, w, preferred_element_type=jnp.float32).astype(o_ref.dtype)


def _choose_tm(mp: int, tm_max: int, sublane: int, min_blocks: int = 4) -> int:
    """Packed-M tile size: large (amortize ~0.35us/step overhead) but with at least
    `min_blocks` grid steps when possible (megacore sharding + DMA/MXU overlap)."""
    if mp <= sublane:
        return mp  # single block equal to the full dim -> always a legal tiling
    t = _round_up(pl.cdiv(mp, min_blocks), sublane)
    return max(sublane, min(tm_max, t))


def mh_router_pallas(x, expert_embedding, *, packed_weight=None, tm=8192,
                     mxu_bf16=True, out_dtype=None):
    """MHRouter forward: matmul(x, expert_embedding) over the last dim of x.

    x: (..., head_dim); expert_embedding: (head_dim, num_experts).
    packed_weight: optional result of pack_router_weight (pack once at init).
    mxu_bf16: bf16 MXU operands (in-kernel cast), f32 accumulate. False = exact f32.
    out_dtype: output dtype (default x.dtype); bf16 halves output HBM traffic.
    """
    *lead, k = x.shape
    k_w, n = expert_embedding.shape
    assert k == k_w, f"contraction mismatch: {k} vs {k_w}"
    out_dtype = x.dtype if out_dtype is None else out_dtype

    m = 1
    for d in lead:
        m *= d
    x2d = x.reshape(m, k)  # free (contiguous) reshape

    pack = 128 // k if (k < 128 and 128 % k == 0) else 1
    m_main = (m // pack) * pack          # bulk rows handled by the kernel
    m_rem = m - m_main                   # < pack remainder rows -> tiny epilogue
    mp = m_main // pack

    outs = []
    if mp > 0:
        if packed_weight is None:
            packed_weight, _ = pack_router_weight(expert_embedding, mxu_bf16=mxu_bf16)
        kp, n_lanes = packed_weight.shape
        n_packed = pack * n

        # (m_main, k) -> (mp, pack*k): free row-major reshape, no padding copies.
        x_bulk = x2d if m_rem == 0 else x2d[:m_main]
        xp = x_bulk.reshape(mp, kp)

        sublane = {1: 32, 2: 16}.get(jnp.dtype(xp.dtype).itemsize, 8)
        tm_eff = _choose_tm(mp, tm, sublane)
        grid_m = pl.cdiv(mp, tm_eff)     # partial last block is fine (no jnp.pad)

        x_bytes = jnp.dtype(xp.dtype).itemsize
        o_bytes = jnp.dtype(out_dtype).itemsize
        w_bytes = jnp.dtype(packed_weight.dtype).itemsize
        cost = pl.CostEstimate(
            flops=2 * mp * kp * n_lanes,  # actual block-diagonal matmul flops
            transcendentals=0,
            bytes_accessed=mp * kp * x_bytes + kp * n_lanes * w_bytes
                           + mp * n_lanes * o_bytes,
        )

        out_p = pl.pallas_call(
            functools.partial(_mh_router_kernel, mxu_bf16=mxu_bf16),
            out_shape=jax.ShapeDtypeStruct((mp, n_lanes), out_dtype),
            grid=(grid_m,),
            in_specs=[
                pl.BlockSpec((tm_eff, kp), lambda i: (i, 0)),    # x marches over M
                pl.BlockSpec((kp, n_lanes), lambda i: (0, 0)),   # weight stays resident
            ],
            out_specs=pl.BlockSpec((tm_eff, n_lanes), lambda i: (i, 0)),
            compiler_params=pltpu.CompilerParams(
                dimension_semantics=("parallel",),   # megacore-shardable on v7x
                vmem_limit_bytes=48 << 20,           # headroom for tm=8192 f32 tiles
            ),
            cost_estimate=cost,
        )(xp, packed_weight)

        if n_lanes != n_packed:            # rare fallback path (weight N was padded)
            out_p = out_p[:, :n_packed]
        outs.append(out_p.reshape(m_main, n))   # free row-major reshape back to (.., N)

    if m_rem > 0:
        # Tiny (< pack rows) epilogue instead of padding the whole array.
        out_tail = jnp.matmul(x2d[m_main:], expert_embedding).astype(out_dtype)
        outs.append(out_tail)

    out2d = outs[0] if len(outs) == 1 else jnp.concatenate(outs, axis=0)
    return out2d.reshape(*lead, n)


if __name__ == "__main__":
    # Module hyperparameters (small, consistent with the forward pass).
    num_experts = 16
    hidden_dim = 32
    num_heads = 4
    head_dim = hidden_dim // num_heads  # 8

    batch, seq = 2, 8

    key = jax.random.PRNGKey(0)
    k_x, k_w, k_x2, k_x3 = jax.random.split(key, 4)

    # Deterministic "parameter" init (torch.randn-equivalent shape).
    expert_embedding = jax.random.normal(
        k_w, (head_dim, num_experts), dtype=jnp.float32
    )
    # One-time packed weights (parameter-init time, not per forward call).
    w_packed_bf16, _ = pack_router_weight(expert_embedding, mxu_bf16=True)
    w_packed_f32, _ = pack_router_weight(expert_embedding, mxu_bf16=False)

    # Input: (batch, seq, num_heads, head_dim) — last dim is contracted.
    x = jax.random.normal(k_x, (batch, seq, num_heads, head_dim), dtype=jnp.float32)
    ref = jnp.matmul(x, expert_embedding)

    # Default fast path: bf16 MXU operands, f32 I/O + f32 accumulation.
    out = jax.block_until_ready(
        mh_router_pallas(x, expert_embedding, packed_weight=w_packed_bf16)
    )
    assert out.shape == (batch, seq, num_heads, num_experts), out.shape
    assert jnp.allclose(out, ref, atol=1e-1, rtol=5e-2), "mismatch (bf16 MXU path)"

    # Bit-exact f32 path (matches the PyTorch reference numerics).
    out_f32 = jax.block_until_ready(
        mh_router_pallas(x, expert_embedding, packed_weight=w_packed_f32,
                         mxu_bf16=False)
    )
    assert jnp.allclose(out_f32, ref, atol=1e-5, rtol=1e-5), "mismatch (f32 path)"

    # Remainder epilogue path (M not a multiple of the 16-row packing, M > pack).
    x_odd = jax.random.normal(k_x2, (1, 5, num_heads, head_dim), dtype=jnp.float32)
    out_odd = jax.block_until_ready(
        mh_router_pallas(x_odd, expert_embedding, packed_weight=w_packed_f32,
                         mxu_bf16=False)
    )
    assert jnp.allclose(out_odd, jnp.matmul(x_odd, expert_embedding),
                        atol=1e-5, rtol=1e-5), "mismatch (remainder epilogue)"

    # M smaller than one packing group (pure epilogue, no pallas_call).
    x_tiny = jax.random.normal(k_x3, (1, 3, num_heads, head_dim), dtype=jnp.float32)
    out_tiny = jax.block_until_ready(mh_router_pallas(x_tiny, expert_embedding))
    assert jnp.allclose(out_tiny, jnp.matmul(x_tiny, expert_embedding),
                        atol=1e-5, rtol=1e-5), "mismatch (tiny M)"

    print("KERNEL_OK")
</pallas_src>

<mosaic_0001>
module attributes {stable_mosaic.version = 11 : i64} {
  func.func @_mh_router_kernel(%arg0: i32, %arg1: memref<4x128xf32, #tpu.memory_space<vmem>>, %arg2: memref<128x256xbf16, #tpu.memory_space<vmem>>, %arg3: memref<4x256xf32, #tpu.memory_space<vmem>>) attributes {dimension_semantics = [#tpu.dimension_semantics<parallel>], iteration_bounds = array<i64: 1>, scalar_prefetch = 0 : i64, scratch_operands = 0 : i64, tpu.core_type = #tpu.core_type<tc>, window_params = [{transform_indices = @transform_0, window_bounds = array<i64: 4, 128>}, {pipeline_mode = #tpu.pipeline_mode<synchronous>, transform_indices = @transform_1, window_bounds = array<i64: 128, 256>}, {transform_indices = @transform_2, window_bounds = array<i64: 4, 256>}]} {
    %c0 = arith.constant 0 : index
    %c0_0 = arith.constant 0 : index
    %0 = vector.load %arg1[%c0, %c0_0] : memref<4x128xf32, #tpu.memory_space<vmem>>, vector<4x128xf32>
    %c0_1 = arith.constant 0 : index
    %c0_2 = arith.constant 0 : index
    %1 = vector.load %arg2[%c0_1, %c0_2] : memref<128x256xbf16, #tpu.memory_space<vmem>>, vector<128x256xbf16>
    %2 = arith.truncf %0 : vector<4x128xf32> to vector<4x128xbf16>
    %cst = arith.constant dense<0.000000e+00> : vector<4x256xf32>
    %3 = tpu.matmul %2, %1, %cst {dimension_numbers = #tpu.dot_dimension_numbers<[1], [0], [0], [1], [0, 0, 1, 1], [], []>} : vector<4x128xbf16>, vector<128x256xbf16>, vector<4x256xf32> -> vector<4x256xf32>
    %c0_3 = arith.constant 0 : index
    %c0_4 = arith.constant 0 : index
    %4 = vector.load %arg3[%c0_3, %c0_4] : memref<4x256xf32, #tpu.memory_space<vmem>>, vector<4x256xf32>
    tpu.vector_store %arg3[%c0_3, %c0_4], %3 {strides = array<i32>} : memref<4x256xf32, #tpu.memory_space<vmem>>, vector<4x256xf32>,
    return
  }
  func.func @transform_0(%arg0: i32) -> (i32, i32) {
    %c0_i32 = arith.constant 0 : i32
    %c0_i32_0 = arith.constant 0 : i32
    return %arg0, %c0_i32 : i32, i32
  }
  func.func @transform_1(%arg0: i32) -> (i32, i32) {
    %c0_i32 = arith.constant 0 : i32
    %c0_i32_0 = arith.constant 0 : i32
    %c0_i32_1 = arith.constant 0 : i32
    return %c0_i32, %c0_i32_0 : i32, i32
  }
  func.func @transform_2(%arg0: i32) -> (i32, i32) {
    %c0_i32 = arith.constant 0 : i32
    %c0_i32_0 = arith.constant 0 : i32
    return %arg0, %c0_i32 : i32, i32
  }
}

</mosaic_0001>

<bundles_post_ra>
// kernel: tpu_custom_call.1
= control target key start
LH: loop header
LB: loop body
LE: loop exit
PB: predicated region body
PF: predicated region fallthrough
CT: control target
= control target key end

     0   :  { %7 = vsyncpa [#allocation3], 0  ;;  %s381_s0 = inlined_call_operand.hbm [shape: f32[4,128], index: 0, kind: input, shape index: {}]   ;;  %s382_s1 = inlined_call_operand.hbm [shape: bf16[128,256], index: 1, kind: input, shape index: {}]   ;;  %s383_s2 = inlined_call_operand.hbm [shape: f32[4,256], index: 2, kind: output, shape index: {}]  }
   0x1   :  { %8 = vsyncpa [#allocation6], 0 }
   0x2   :  { %9 = vsyncpa [#allocation4], 0  ;;  %s317_s9 = smov [#allocation2]   ;;  %s318_s11 = smov [#allocation5]  }
   0x3   :  { %s16_s10 = sshll.u32 %s317_s9, 4  ;;  %s25_s12 = sshll.u32 %s318_s11, 4  ;;  %s17_s10 = int_to_ptr.vmem [resolvable:$true] %s16_s10  ;;  %s338_s12 = int_to_ptr.vmem [resolvable:$true] %s25_s12 }
   0x4   :  { %s245_s15 = scalar_lea.hbm %s381_s0, 64 }
   0x5   :  { %p246_p0 = scmp.ne.s32.totalorder %s381_s0, %s245_s15  ;;  %p249_p1 = scmp.lt.u32.totalorder %s245_s15, %s381_s0 }
   0x7   :  { %p251_p2 = pnand %p249_p1, %p246_p0 }
   0x9   :  { %254 = shalt.err (!%p251_p2)
}
   0xa   :  { %s255_s20 = scalar_lea.vmem %s17_s10, 64  ;;  %p260_p4 = scmp.lt.s32.totalorder %s17_s10, %s17_s10 }
   0xb   :  { %p256_p3 = scmp.ne.s32.totalorder %s17_s10, %s255_s20  ;;  %p261_p5 = scmp.lt.s32.totalorder %s255_s20, %s255_s20 }
   0xd   :  { %p262_p6 = por %p261_p5, %p260_p4 }
   0xf   :  { %p263_p7 = pnand %p262_p6, %p256_p3 }
  0x11   :  { %266 = shalt.err (!%p263_p7)
}
  0x12   :  { %19 = dma.hbm_to_vmem [thread:$0]  %s381_s0, 64, %s17_s10, [#allocation3]  }
  0x13   :  { %s267_s25 = scalar_lea.hbm %s382_s1, 2048 }
  0x14   :  { %p268_p8 = scmp.ne.s32.totalorder %s382_s1, %s267_s25  ;;  %p271_p9 = scmp.lt.u32.totalorder %s267_s25, %s382_s1 }
  0x16   :  { %p273_p10 = pnand %p271_p9, %p268_p8 }
  0x18   :  { %276 = shalt.err (!%p273_p10)
}
  0x19   :  { %s277_s30 = scalar_lea.vmem %s338_s12, 2048  ;;  %p282_p12 = scmp.lt.s32.totalorder %s338_s12, %s338_s12 }
  0x1a   :  { %p278_p11 = scmp.ne.s32.totalorder %s338_s12, %s277_s30  ;;  %p283_p13 = scmp.lt.s32.totalorder %s277_s30, %s277_s30 }
  0x1c   :  { %p284_p0 = por %p283_p13, %p282_p12 }
  0x1e   :  { %p285_p1 = pnand %p284_p0, %p278_p11 }
  0x20   :  { %288 = shalt.err (!%p285_p1)
}
  0x21   :  { %s319_s0 = smov 128   ;;  %s320_s3 = smov 8  }
  0x22   :  { %31 = dma.hbm_to_vmem [thread:$0]  %s382_s1, 2048, %s338_s12, [#allocation6], %s319_s0, %s319_s0, %s320_s3  }
  0x23   :  { %311 = dma.done.wait [#allocation3], 64  }
  0x24   :  { %312 = vsyncadd [#allocation3], 4294967232 }
  0x25   :  { %313 = dma.done.wait [#allocation6], 2048  }
  0x26   :  { %314 = vsyncadd [#allocation6], 4294965248  ;;  %v321_v0 = vmov 0   ;;  %v221_v1 = vld [vmem:[#allocation5 + $0x4] ss:$8 sps:$4 sm:$0xff]   ;;  %s322_s1 = smov [#allocation7]  }
  0x27   :  { %169 = vmatprep.mubr.bf16.mxu0 %v321_v0  ;;  %v223_v2 = vld [vmem:[#allocation5] ss:$8 sps:$4 sm:$0xff]   ;;  %137 = vmatprep.subr.bf16.mxu0 %v221_v1  ;;  %v224_v3 = vld [vmem:[#allocation5 + $0x14] ss:$8 sps:$4 sm:$0xff]   ;;  %v226_v4 = vld [vmem:[#allocation5 + $0x10] ss:$8 sps:$4 sm:$0xff]  }
  0x28   :  { %138 = vmatpush1.bf16.msra.mxu0 %v223_v2  ;;  %v227_v5 = vld [vmem:[#allocation5 + $0x24] ss:$8 sps:$4 sm:$0xff]   ;;  %v229_v6 = vld [vmem:[#allocation5 + $0x20] ss:$8 sps:$4 sm:$0xff]   ;;  %v230_v7 = vld [vmem:[#allocation5 + $0x34] ss:$8 sps:$4 sm:$0xff]  }
  0x29   :  { %139 = vmatprep.subr.bf16.mxu0 %v224_v3  ;;  %v232_v8 = vld [vmem:[#allocation5 + $0x30] ss:$8 sps:$4 sm:$0xff]   ;;  %v233_v9 = vld [vmem:[#allocation5 + $0x44] ss:$8 sps:$4 sm:$0xff]   ;;  %v235_v10 = vld [vmem:[#allocation5 + $0x40] ss:$8 sps:$4 sm:$0xff]  }
  0x2a   :  { %v236_v11 = vld [vmem:[#allocation5 + $0x54] ss:$8 sps:$4 sm:$0xff]   ;;  %v238_v12 = vld [vmem:[#allocation5 + $0x50] ss:$8 sps:$4 sm:$0xff]   ;;  %v239_v13 = vld [vmem:[#allocation5 + $0x64] ss:$8 sps:$4 sm:$0xff]  }
  0x2b   :  { %v241_v14 = vld [vmem:[#allocation5 + $0x60] ss:$8 sps:$4 sm:$0xff]   ;;  %v242_v15 = vld [vmem:[#allocation5 + $0x74] ss:$8 sps:$4 sm:$0xff]   ;;  %v244_v16 = vld [vmem:[#allocation5 + $0x70] ss:$8 sps:$4 sm:$0xff]  }
  0x2c   :  { %140 = vmatpush1.bf16.msra.mxu0 %v226_v4  ;;  %v39_v17 = vld [vmem:[#allocation2] sm:$0xf]  ;;  %s189_s6 = sshll.u32 %s322_s1, 4  ;;  %s190_s6 = int_to_ptr.vmem [resolvable:$true] %s189_s6 }
  0x2d   :  { %141 = vmatprep.subr.bf16.mxu0 %v227_v5  ;;  %v56_v18 = vpack.c.bf16 %v39_v17, %v39_v17  ;;  %s289_s7 = scalar_lea.vmem %s190_s6, 128  ;;  %p294_p3 = scmp.lt.s32.totalorder %s190_s6, %s190_s6 }
  0x2e   :  { %p290_p2 = scmp.ne.s32.totalorder %s190_s6, %s289_s7  ;;  %p295_p4 = scmp.lt.s32.totalorder %s289_s7, %s289_s7 }
  0x30   :  { %142 = vmatpush1.bf16.msra.mxu0 %v229_v6  ;;  %p296_p5 = por %p295_p4, %p294_p3 }
  0x31   :  { %143 = vmatprep.subr.bf16.mxu0 %v230_v7 }
  0x32   :  { %p297_p6 = pnand %p296_p5, %p290_p2 }
  0x34   :  { %144 = vmatpush1.bf16.msra.mxu0 %v232_v8 }
  0x35   :  { %145 = vmatprep.subr.bf16.mxu0 %v233_v9 }
  0x38   :  { %146 = vmatpush1.bf16.msra.mxu0 %v235_v10 }
  0x39   :  { %147 = vmatprep.subr.bf16.mxu0 %v236_v11 }
  0x3c   :  { %148 = vmatpush1.bf16.msra.mxu0 %v238_v12 }
  0x3d   :  { %149 = vmatprep.subr.bf16.mxu0 %v239_v13 }
  0x40   :  { %150 = vmatpush1.bf16.msra.mxu0 %v241_v14 }
  0x41   :  { %151 = vmatprep.subr.bf16.mxu0 %v242_v15 }
  0x44   :  { %152 = vmatpush1.bf16.msra.mxu0 %v244_v16 }
  0x47   :  { %170 = vmatmul.mubr.bf16.vlgmr.msra.gmra.mrb[0].mxu0 %v56_v18 }
 0x11a   :  { %v171_v19 = vpop.f32.mrb[0].mxu0 }
 0x11b   :  { %v173_v20 = vpop.f32.mrb[1].mxu0 }
 0x11c   :  { %v180_v21 = vcombine.low %v171_v19, %v173_v20  ;;  %v175_v22 = vpop.f32.mrb[2].mxu0 }
 0x11d   :  { %v176_v23 = vpop.f32.mrb[3].mxu0 }
 0x11e   :  { %182 = vst [vmem:[#allocation7] sm:$0xff] %v180_v21 }
 0x11f   :  { %300 = shalt.err (!%p297_p6)
}
 0x120   :  { %s301_s10 = scalar_lea.hbm %s383_s2, 128 }
 0x121   :  { %p302_p7 = scmp.ne.s32.totalorder %s383_s2, %s301_s10  ;;  %p305_p8 = scmp.lt.u32.totalorder %s301_s10, %s383_s2 }
 0x123   :  { %p307_p9 = pnand %p305_p8, %p302_p7 }
 0x125   :  { %310 = shalt.err (!%p307_p9)
}
 0x126   :  { %192 = dma.vmem_to_hbm [thread:$0]  %s190_s6, 128, %s383_s2, [#allocation4]  }
 0x127   :  { %315 = dma.done.wait [#allocation4], 128  }
 0x128   :  { %316 = vsyncadd [#allocation4], 4294967168 }
 0x129   :  { %196 = vsyncpa [#allocation3], 1 }
 0x12a   :  { %197 = vsyncpa [#allocation6], 1 }
 0x12b   :  { %198 = vsyncpa [#allocation4], 1 }

</bundles_post_ra>
